<compile_context>
chip_gen: v7x
topology: tpu7x:2x2x1
jax: 0.10.0
libtpu: 0.0.40
codegen_flags: <defaults>
</compile_context>

<pallas_src>
import jax
import jax.numpy as jnp
from jax.experimental import pallas as pl
from jax.experimental.pallas import tpu as pltpu

LANE = 128
SUBLANE = 8


def _round_up(n, m):
    return ((n + m - 1) // m) * m


def ann_kernel(x_ref, w1_ref, b1_ref, w2_ref, b2_ref, o_ref):
    # hidden = x @ W1 + b1   (MXU, f32 accumulate)
    h = jnp.dot(x_ref[...], w1_ref[...], preferred_element_type=jnp.float32)
    h = h + b1_ref[...]                       # b1 is (1, k2), broadcasts over rows
    # dropout -> identity at inference; ReLU in f32 on the VPU
    h = jnp.maximum(h, 0.0)
    # out = relu(hidden) @ W2 + b2
    out = jnp.dot(h.astype(w2_ref.dtype), w2_ref[...],
                  preferred_element_type=jnp.float32)
    out = out + b2_ref[...]                   # b2 is (1, no)
    o_ref[...] = out.astype(o_ref.dtype)


def prepare_params(w1, b1, w2, b2, *, use_bf16=True):
    """One-time parameter prep: pad feature axes to 128 lanes, cast for the MXU.

    Call once per set of weights (outside the per-step forward) and reuse the
    returned dict across calls, so the padding/casting HBM traffic is not paid
    on every forward.
      w1: [n_input, n_hidden], b1: [n_hidden] or [1, n_hidden]
      w2: [n_hidden, n_output], b2: [n_output] or [1, n_output]
    """
    n_in, n_hidden = w1.shape
    n_out = w2.shape[1]
    k1, k2, no = (_round_up(d, LANE) for d in (n_in, n_hidden, n_out))
    mxu_dtype = jnp.bfloat16 if use_bf16 else jnp.float32

    # Zero-padding keeps the math exact: padded input/hidden features contribute
    # 0, padded output columns are 0 and are sliced off in the wrapper.
    w1p = jnp.zeros((k1, k2), mxu_dtype).at[:n_in, :n_hidden].set(w1.astype(mxu_dtype))
    b1p = jnp.zeros((1, k2), jnp.float32).at[0, :n_hidden].set(
        jnp.reshape(b1, (-1,)).astype(jnp.float32))
    w2p = jnp.zeros((k2, no), mxu_dtype).at[:n_hidden, :n_out].set(w2.astype(mxu_dtype))
    b2p = jnp.zeros((1, no), jnp.float32).at[0, :n_out].set(
        jnp.reshape(b2, (-1,)).astype(jnp.float32))

    return {
        "w1": w1p, "b1": b1p, "w2": w2p, "b2": b2p,
        "dims": dict(n_in=n_in, n_hidden=n_hidden, n_out=n_out, k1=k1, k2=k2, no=no),
    }


def ann_forward(x, params, *, block_rows=256, out_dtype=jnp.float32):
    """x: [B, n_input]; params from prepare_params() -> [B, n_output]."""
    w1p, b1p, w2p, b2p = params["w1"], params["b1"], params["w2"], params["b2"]
    d = params["dims"]
    n_in, n_out = d["n_in"], d["n_out"]
    k1, k2, no = d["k1"], d["k2"], d["no"]
    mxu_dtype = jnp.dtype(w1p.dtype)
    out_dtype = jnp.dtype(out_dtype)

    B, xin = x.shape
    assert xin == n_in, f"expected x feature dim {n_in}, got {xin}"

    # --- Row tile: 128-aligned; >= 2 grid steps when the batch allows (v7x). ---
    Bp8 = _round_up(B, SUBLANE)
    if Bp8 < 2 * LANE:
        tm = Bp8                                        # single full-extent block
    else:
        tm = max(LANE, _round_up(min(block_rows, pl.cdiv(Bp8, 2)), LANE))
    Bp = _round_up(Bp8, tm)                             # waste bounded by tm-1 rows

    # --- x is the only per-call stream; skip the copy when already aligned. ---
    if B == Bp and n_in == k1 and jnp.dtype(x.dtype) == mxu_dtype:
        xp = x
    else:
        xp = jnp.zeros((Bp, k1), mxu_dtype).at[:B, :n_in].set(x.astype(mxu_dtype))

    grid = (Bp // tm,)

    # --- VMEM budget derived from the actual footprint (v7x-safe, <= 56 MiB). ---
    w_itemsize = mxu_dtype.itemsize
    o_itemsize = out_dtype.itemsize
    weight_bytes = (k1 * k2 + k2 * no) * w_itemsize + (k2 + no) * 4   # single-buffered
    stream_bytes = 2 * tm * k1 * w_itemsize + 2 * tm * no * o_itemsize
    temp_bytes = tm * k2 * 4 + tm * no * 4                            # f32 intermediates
    vmem_limit = int(min(56 * 1024 * 1024,
                         max(32 * 1024 * 1024,
                             2 * (weight_bytes + stream_bytes + temp_bytes))))

    flops = 2 * Bp * (k1 * k2 + k2 * no)
    bytes_accessed = int(
        Bp * k1 * w_itemsize + weight_bytes + Bp * no * o_itemsize)

    # NOTE: for genuinely tiny problems, letting XLA fuse the two GEMMs directly
    # can beat the kernel-launch + padding overhead; this path always uses Pallas.
    out_p = pl.pallas_call(
        ann_kernel,
        out_shape=jax.ShapeDtypeStruct((Bp, no), out_dtype),
        grid_spec=pltpu.PrefetchScalarGridSpec(
            num_scalar_prefetch=0,
            grid=grid,
            in_specs=[
                # x: streamed per row-tile (double-buffered by default).
                pl.BlockSpec((tm, k1), lambda i: (i, 0)),
                # Weights / biases: constant index_map -> fetched once, resident;
                # Buffered(1) avoids a wasted second VMEM buffer.
                pl.BlockSpec((k1, k2), lambda i: (0, 0), pipeline_mode=pl.Buffered(1)),
                pl.BlockSpec((1, k2), lambda i: (0, 0), pipeline_mode=pl.Buffered(1)),
                pl.BlockSpec((k2, no), lambda i: (0, 0), pipeline_mode=pl.Buffered(1)),
                pl.BlockSpec((1, no), lambda i: (0, 0), pipeline_mode=pl.Buffered(1)),
            ],
            out_specs=pl.BlockSpec((tm, no), lambda i: (i, 0)),
        ),
        compiler_params=pltpu.CompilerParams(
            dimension_semantics=("parallel",),
            vmem_limit_bytes=vmem_limit,
        ),
        cost_estimate=pl.CostEstimate(
            flops=flops, transcendentals=0, bytes_accessed=bytes_accessed),
    )(xp, w1p, b1p, w2p, b2p)

    if Bp != B or no != n_out:
        out_p = out_p[:B, :n_out]
    return out_p


def ref_forward(x, w1, b1, w2, b2):
    h = jnp.maximum(x @ w1 + b1, 0.0)
    return h @ w2 + b2


if __name__ == "__main__":
    # Small shapes consistent with the module; B=200 exercises the non-128
    # batch path (single full-extent row tile, no dead-row padding).
    B, n_input, n_hidden, n_output = 200, 32, 64, 16

    key = jax.random.PRNGKey(0)
    kx, kw1, kb1, kw2, kb2 = jax.random.split(key, 5)

    x = jax.random.normal(kx, (B, n_input), dtype=jnp.float32)

    # Deterministic parameter init (PyTorch Linear-style uniform bounds),
    # stored pre-transposed as [in_features, out_features].
    bound1 = 1.0 / jnp.sqrt(n_input)
    w1 = jax.random.uniform(kw1, (n_input, n_hidden), jnp.float32, -bound1, bound1)
    b1 = jax.random.uniform(kb1, (n_hidden,), jnp.float32, -bound1, bound1)
    bound2 = 1.0 / jnp.sqrt(n_hidden)
    w2 = jax.random.uniform(kw2, (n_hidden, n_output), jnp.float32, -bound2, bound2)
    b2 = jax.random.uniform(kb2, (n_output,), jnp.float32, -bound2, bound2)

    ref = ref_forward(x, w1, b1, w2, b2)

    # Exact f32 path (weights prepared once, reused across calls).
    params_f32 = prepare_params(w1, b1, w2, b2, use_bf16=False)
    out_f32 = jax.block_until_ready(
        ann_forward(x, params_f32, block_rows=128, out_dtype=jnp.float32))
    assert out_f32.shape == (B, n_output)
    assert jnp.allclose(out_f32, ref, atol=1e-5, rtol=1e-5)

    # bf16-MXU-input / f32-accumulate path with bf16 output (looser tolerance;
    # note inputs/weights are quantized to bf16 before the MXU).
    params_bf16 = prepare_params(w1, b1, w2, b2, use_bf16=True)
    out_bf16 = jax.block_until_ready(
        ann_forward(x, params_bf16, block_rows=128, out_dtype=jnp.bfloat16))
    assert out_bf16.shape == (B, n_output)
    assert jnp.allclose(out_bf16.astype(jnp.float32), ref, atol=5e-2, rtol=5e-2)

    print("KERNEL_OK")
</pallas_src>

<mosaic_0001>
module attributes {stable_mosaic.version = 11 : i64} {
  func.func @ann_kernel(%arg0: i32, %arg1: memref<200x128xf32, #tpu.memory_space<vmem>>, %arg2: memref<128x128xf32, #tpu.memory_space<vmem>>, %arg3: memref<1x128xf32, #tpu.memory_space<vmem>>, %arg4: memref<128x128xf32, #tpu.memory_space<vmem>>, %arg5: memref<1x128xf32, #tpu.memory_space<vmem>>, %arg6: memref<200x128xf32, #tpu.memory_space<vmem>>) attributes {dimension_semantics = [#tpu.dimension_semantics<parallel>], iteration_bounds = array<i64: 1>, scalar_prefetch = 0 : i64, scratch_operands = 0 : i64, tpu.core_type = #tpu.core_type<tc>, window_params = [{transform_indices = @transform_0, window_bounds = array<i64: 200, 128>}, {pipeline_mode = #tpu.pipeline_mode<synchronous>, transform_indices = @transform_1, window_bounds = array<i64: 128, 128>}, {pipeline_mode = #tpu.pipeline_mode<synchronous>, transform_indices = @transform_2, window_bounds = array<i64: 1, 128>}, {pipeline_mode = #tpu.pipeline_mode<synchronous>, transform_indices = @transform_3, window_bounds = array<i64: 128, 128>}, {pipeline_mode = #tpu.pipeline_mode<synchronous>, transform_indices = @transform_4, window_bounds = array<i64: 1, 128>}, {transform_indices = @transform_5, window_bounds = array<i64: 200, 128>}]} {
    %c0 = arith.constant 0 : index
    %c0_0 = arith.constant 0 : index
    %0 = vector.load %arg1[%c0, %c0_0] : memref<200x128xf32, #tpu.memory_space<vmem>>, vector<200x128xf32>
    %c0_1 = arith.constant 0 : index
    %c0_2 = arith.constant 0 : index
    %1 = vector.load %arg2[%c0_1, %c0_2] : memref<128x128xf32, #tpu.memory_space<vmem>>, vector<128x128xf32>
    %cst = arith.constant dense<0.000000e+00> : vector<200x128xf32>
    %2 = tpu.matmul %0, %1, %cst {dimension_numbers = #tpu.dot_dimension_numbers<[1], [0], [0], [1], [0, 0, 1, 1], [], []>} : vector<200x128xf32>, vector<128x128xf32>, vector<200x128xf32> -> vector<200x128xf32>
    %c0_3 = arith.constant 0 : index
    %c0_4 = arith.constant 0 : index
    %3 = vector.load %arg3[%c0_3, %c0_4] : memref<1x128xf32, #tpu.memory_space<vmem>>, vector<1x128xf32>
    %4 = vector.broadcast %3 : vector<1x128xf32> to vector<200x128xf32>
    %5 = arith.addf %2, %4 : vector<200x128xf32>
    %cst_5 = arith.constant 0.000000e+00 : f32
    %6 = vector.broadcast %cst_5 : f32 to vector<200x128xf32>
    %7 = arith.maximumf %5, %6 : vector<200x128xf32>
    %c0_6 = arith.constant 0 : index
    %c0_7 = arith.constant 0 : index
    %8 = vector.load %arg4[%c0_6, %c0_7] : memref<128x128xf32, #tpu.memory_space<vmem>>, vector<128x128xf32>
    %cst_8 = arith.constant dense<0.000000e+00> : vector<200x128xf32>
    %9 = tpu.matmul %7, %8, %cst_8 {dimension_numbers = #tpu.dot_dimension_numbers<[1], [0], [0], [1], [0, 0, 1, 1], [], []>} : vector<200x128xf32>, vector<128x128xf32>, vector<200x128xf32> -> vector<200x128xf32>
    %c0_9 = arith.constant 0 : index
    %c0_10 = arith.constant 0 : index
    %10 = vector.load %arg5[%c0_9, %c0_10] : memref<1x128xf32, #tpu.memory_space<vmem>>, vector<1x128xf32>
    %11 = vector.broadcast %10 : vector<1x128xf32> to vector<200x128xf32>
    %12 = arith.addf %9, %11 : vector<200x128xf32>
    %c0_11 = arith.constant 0 : index
    %c0_12 = arith.constant 0 : index
    %13 = vector.load %arg6[%c0_11, %c0_12] : memref<200x128xf32, #tpu.memory_space<vmem>>, vector<200x128xf32>
    tpu.vector_store %arg6[%c0_11, %c0_12], %12 {strides = array<i32>} : memref<200x128xf32, #tpu.memory_space<vmem>>, vector<200x128xf32>,
    return
  }
  func.func @transform_0(%arg0: i32) -> (i32, i32) {
    %c0_i32 = arith.constant 0 : i32
    %c0_i32_0 = arith.constant 0 : i32
    return %arg0, %c0_i32 : i32, i32
  }
  func.func @transform_1(%arg0: i32) -> (i32, i32) {
    %c0_i32 = arith.constant 0 : i32
    %c0_i32_0 = arith.constant 0 : i32
    %c0_i32_1 = arith.constant 0 : i32
    return %c0_i32, %c0_i32_0 : i32, i32
  }
  func.func @transform_2(%arg0: i32) -> (i32, i32) {
    %c0_i32 = arith.constant 0 : i32
    %c0_i32_0 = arith.constant 0 : i32
    %c0_i32_1 = arith.constant 0 : i32
    return %c0_i32, %c0_i32_0 : i32, i32
  }
  func.func @transform_3(%arg0: i32) -> (i32, i32) {
    %c0_i32 = arith.constant 0 : i32
    %c0_i32_0 = arith.constant 0 : i32
    %c0_i32_1 = arith.constant 0 : i32
    return %c0_i32, %c0_i32_0 : i32, i32
  }
  func.func @transform_4(%arg0: i32) -> (i32, i32) {
    %c0_i32 = arith.constant 0 : i32
    %c0_i32_0 = arith.constant 0 : i32
    %c0_i32_1 = arith.constant 0 : i32
    return %c0_i32, %c0_i32_0 : i32, i32
  }
  func.func @transform_5(%arg0: i32) -> (i32, i32) {
    %c0_i32 = arith.constant 0 : i32
    %c0_i32_0 = arith.constant 0 : i32
    return %arg0, %c0_i32 : i32, i32
  }
}

</mosaic_0001>

<bundles_post_ra>
// kernel: tpu_custom_call.1
= control target key start
LH: loop header
LB: loop body
LE: loop exit
PB: predicated region body
PF: predicated region fallthrough
CT: control target
= control target key end

     0   :  { %10 = vsyncpa [#allocation3], 0  ;;  %s1312_s0 = inlined_call_operand.hbm [shape: f32[200,128], index: 0, kind: input, shape index: {}]   ;;  %s1313_s1 = inlined_call_operand.hbm [shape: f32[128,128], index: 1, kind: input, shape index: {}]   ;;  %s1314_s2 = inlined_call_operand.vmem [shape: f32[1,128], index: 2, kind: input, shape index: {}]   ;;  %s1315_s3 = inlined_call_operand.hbm [shape: f32[128,128], index: 3, kind: input, shape index: {}]   ;;  %s1316_s4 = inlined_call_operand.vmem [shape: f32[1,128], index: 4, kind: input, shape index: {}]   ;;  %s1317_s5 = inlined_call_operand.hbm [shape: f32[200,128], index: 5, kind: output, shape index: {}]  }
   0x1   :  { %11 = vsyncpa [#allocation6], 0 }
   0x2   :  { %12 = vsyncpa [#allocation4], 0  ;;  %s1030_s18 = smov [#allocation5]   ;;  %s1031_s20 = smov [#allocation2]  }
   0x3   :  { %s30_s19 = sshll.u32 %s1030_s18, 4  ;;  %s18_s21 = sshll.u32 %s1031_s20, 4  ;;  %s31_s19 = int_to_ptr.vmem [resolvable:$true] %s30_s19  ;;  %s1069_s21 = int_to_ptr.vmem [resolvable:$true] %s18_s21 }
   0x4   :  { %s936_s24 = scalar_lea.hbm %s1313_s1, 2048 }
   0x5   :  { %p937_p0 = scmp.ne.s32.totalorder %s1313_s1, %s936_s24  ;;  %p940_p1 = scmp.lt.u32.totalorder %s936_s24, %s1313_s1 }
   0x7   :  { %p942_p2 = pnand %p940_p1, %p937_p0 }
   0x9   :  { %945 = shalt.err (!%p942_p2)
}
   0xa   :  { %s946_s29 = scalar_lea.vmem %s31_s19, 2048  ;;  %p951_p4 = scmp.lt.s32.totalorder %s31_s19, %s31_s19 }
   0xb   :  { %p947_p3 = scmp.ne.s32.totalorder %s31_s19, %s946_s29  ;;  %p952_p5 = scmp.lt.s32.totalorder %s946_s29, %s946_s29 }
   0xd   :  { %p953_p6 = por %p952_p5, %p951_p4 }
   0xf   :  { %p954_p7 = pnand %p953_p6, %p947_p3 }
  0x11   :  { %957 = shalt.err (!%p954_p7)
}
  0x12   :  { %s1032_s30 = smov 128   ;;  %s1033_s6 = smov 8  }
  0x13   :  { %36 = dma.hbm_to_vmem [thread:$0]  %s1313_s1, 2048, %s31_s19, [#allocation6], %s1032_s30, %s1032_s30, %s1033_s6  }
  0x14   :  { %s958_s11 = scalar_lea.hbm %s1312_s0, 3200 }
  0x15   :  { %p959_p8 = scmp.ne.s32.totalorder %s1312_s0, %s958_s11  ;;  %p962_p9 = scmp.lt.u32.totalorder %s958_s11, %s1312_s0 }
  0x17   :  { %p964_p10 = pnand %p962_p9, %p959_p8 }
  0x19   :  { %967 = shalt.err (!%p964_p10)
}
  0x1a   :  { %s968_s16 = scalar_lea.vmem %s1069_s21, 3200  ;;  %p973_p12 = scmp.lt.s32.totalorder %s1069_s21, %s1069_s21 }
  0x1b   :  { %p969_p11 = scmp.ne.s32.totalorder %s1069_s21, %s968_s16  ;;  %p974_p13 = scmp.lt.s32.totalorder %s968_s16, %s968_s16 }
  0x1d   :  { %p975_p0 = por %p974_p13, %p973_p12 }
  0x1f   :  { %p976_p1 = pnand %p975_p0, %p969_p11 }
  0x21   :  { %979 = shalt.err (!%p976_p1)
}
  0x22   :  { %24 = dma.hbm_to_vmem [thread:$0]  %s1312_s0, 3200, %s1069_s21, [#allocation3], %s1032_s30, %s1032_s30, %s1033_s6  }
  0x23   :  { %s1034_s18 = smov [#allocation7]   ;;  %s980_s23 = scalar_lea.hbm %s1315_s3, 2048 }
  0x24   :  { %s44_s19 = sshll.u32 %s1034_s18, 4  ;;  %p981_p2 = scmp.ne.s32.totalorder %s1315_s3, %s980_s23  ;;  %s45_s19 = int_to_ptr.vmem [resolvable:$true] %s44_s19 }
  0x25   :  { %p984_p3 = scmp.lt.u32.totalorder %s980_s23, %s1315_s3 }
  0x27   :  { %p986_p4 = pnand %p984_p3, %p981_p2 }
  0x29   :  { %989 = shalt.err (!%p986_p4)
}
  0x2a   :  { %s990_s28 = scalar_lea.vmem %s45_s19, 2048  ;;  %p995_p6 = scmp.lt.s32.totalorder %s45_s19, %s45_s19 }
  0x2b   :  { %p991_p5 = scmp.ne.s32.totalorder %s45_s19, %s990_s28  ;;  %p996_p7 = scmp.lt.s32.totalorder %s990_s28, %s990_s28 }
  0x2d   :  { %p997_p8 = por %p996_p7, %p995_p6 }
  0x2f   :  { %p998_p9 = pnand %p997_p8, %p991_p5 }
  0x31   :  { %1001 = shalt.err (!%p998_p9)
}
  0x32   :  { %50 = dma.hbm_to_vmem [thread:$0]  %s1315_s3, 2048, %s45_s19, [#allocation6], %s1032_s30, %s1032_s30, %s1033_s6  }
  0x33   :  { %1024 = dma.done.wait [#allocation3], 3200  }
  0x34   :  { %1025 = vsyncadd [#allocation3], 4294964096 }
  0x35   :  { %1026 = dma.done.wait [#allocation6], 4096  }
  0x36   :  { %1027 = vsyncadd [#allocation6], 4294963200  ;;  %v1035_v0 = vmov 0.0|0.0   ;;  %vm1036_vm0 = vmmov 0   ;;  %v1037_v1 = vmov 0.0   ;;  %v87_v2 = vld [vmem:[#allocation5] sm:$0xff] }
  0x37   :  { %879 = vmatprep.subr.bf16.mxu0 %v1035_v0  ;;  %697 = vmatprep.mubr.msk.f32.mxu0 %vm1036_vm0, %v1037_v1  ;;  %v88_v3 = vld [vmem:[#allocation5 + $0x8] sm:$0xff]  ;;  %v89_v4 = vld [vmem:[#allocation5 + $0x10] sm:$0xff]  ;;  %v90_v6 = vld [vmem:[#allocation5 + $0x18] sm:$0xff] }
  0x38   :  { %903 = vmatprep.subr.bf16.mxu1 %v1035_v0  ;;  %804 = vmatprep.mubr.msk.f32.mxu1 %vm1036_vm0, %v1037_v1  ;;  %v880_v5 = vpack.c.bf16 %v88_v3, %v87_v2  ;;  %v883_v7 = vpack.c.bf16 %v90_v6, %v89_v4  ;;  %v91_v8 = vld [vmem:[#allocation5 + $0x20] sm:$0xff]  ;;  %v92_v9 = vld [vmem:[#allocation5 + $0x28] sm:$0xff]  ;;  %v93_v11 = vld [vmem:[#allocation5 + $0x30] sm:$0xff] }
  0x39   :  { %v886_v10 = vpack.c.bf16 %v92_v9, %v91_v8  ;;  %v94_v12 = vld [vmem:[#allocation5 + $0x38] sm:$0xff]  ;;  %v95_v14 = vld [vmem:[#allocation5 + $0x40] sm:$0xff]  ;;  %v96_v15 = vld [vmem:[#allocation5 + $0x48] sm:$0xff] }
  0x3a   :  { %881 = vmatpush3.bf16.msra.mxu0 %v880_v5  ;;  %v889_v13 = vpack.c.bf16 %v94_v12, %v93_v11  ;;  %v325_v16 = vld [vmem:[#allocation7] sm:$0xff]  ;;  %v326_v17 = vld [vmem:[#allocation7 + $0x8] sm:$0xff]  ;;  %v327_v18 = vld [vmem:[#allocation7 + $0x10] sm:$0xff]  ;;  %v892_v20 = vpack.c.bf16 %v96_v15, %v95_v14 }
  0x3b   :  { %882 = vmatprep.subr.bf16.mxu0 %v1035_v0  ;;  %v328_v19 = vld [vmem:[#allocation7 + $0x18] sm:$0xff]  ;;  %v904_v21 = vpack.c.bf16 %v326_v17, %v325_v16  ;;  %v97_v22 = vld [vmem:[#allocation5 + $0x50] sm:$0xff]  ;;  %v329_v25 = vld [vmem:[#allocation7 + $0x20] sm:$0xff] }
  0x3c   :  { %v98_v23 = vld [vmem:[#allocation5 + $0x58] sm:$0xff]  ;;  %v907_v24 = vpack.c.bf16 %v328_v19, %v327_v18  ;;  %v330_v26 = vld [vmem:[#allocation7 + $0x28] sm:$0xff]  ;;  %v99_v28 = vld [vmem:[#allocation5 + $0x60] sm:$0xff] }
  0x3d   :  { %905 = vmatpush3.bf16.msra.mxu1 %v904_v21  ;;  %v895_v27 = vpack.c.bf16 %v98_v23, %v97_v22  ;;  %v100_v29 = vld [vmem:[#allocation5 + $0x68] sm:$0xff]  ;;  %v910_v30 = vpack.c.bf16 %v330_v26, %v329_v25  ;;  %v331_v31 = vld [vmem:[#allocation7 + $0x30] sm:$0xff]  ;;  %v332_v32 = vld [vmem:[#allocation7 + $0x38] sm:$0xff] }
  0x3e   :  { %884 = vmatpush3.bf16.msra.mxu0 %v883_v7  ;;  %906 = vmatprep.subr.bf16.mxu1 %v1035_v0  ;;  %v898_v33 = vpack.c.bf16 %v100_v29, %v99_v28  ;;  %v101_v34 = vld [vmem:[#allocation5 + $0x70] sm:$0xff]  ;;  %v102_v35 = vld [vmem:[#allocation5 + $0x78] sm:$0xff]  ;;  %v913_v36 = vpack.c.bf16 %v332_v32, %v331_v31  ;;  %v333_v37 = vld [vmem:[#allocation7 + $0x40] sm:$0xff] }
  0x3f   :  { %885 = vmatprep.subr.bf16.mxu0 %v1035_v0  ;;  %v334_v38 = vld [vmem:[#allocation7 + $0x48] sm:$0xff]  ;;  %v901_v39 = vpack.c.bf16 %v102_v35, %v101_v34  ;;  %v335_v41 = vld [vmem:[#allocation7 + $0x50] sm:$0xff]  ;;  %v336_v42 = vld [vmem:[#allocation7 + $0x58] sm:$0xff] }
  0x40   :  { %v916_v40 = vpack.c.bf16 %v334_v38, %v333_v37  ;;  %v62_v43 = vld [vmem:[#allocation2] sm:$0xff]  ;;  %v919_v44 = vpack.c.bf16 %v336_v42, %v335_v41  ;;  %v337_v45 = vld [vmem:[#allocation7 + $0x60] sm:$0xff]  ;;  %v338_v46 = vld [vmem:[#allocation7 + $0x68] sm:$0xff] }
  0x41   :  { %908 = vmatpush3.bf16.msra.mxu1 %v907_v24  ;;  %v63_v47 = vld [vmem:[#allocation2 + $0x8] sm:$0xff]  ;;  %v922_v48 = vpack.c.bf16 %v338_v46, %v337_v45  ;;  %v64_v49 = vld [vmem:[#allocation2 + $0x10] sm:$0xff]  ;;  %v65_v50 = vld [vmem:[#allocation2 + $0x18] sm:$0xff] }
  0x42   :  { %887 = vmatpush3.bf16.msra.mxu0 %v886_v10  ;;  %909 = vmatprep.subr.bf16.mxu1 %v1035_v0  ;;  %v66_v51 = vld [vmem:[#allocation2 + $0x20] sm:$0xff]  ;;  %v67_v52 = vld [vmem:[#allocation2 + $0x28] sm:$0xff]  ;;  %v68_v53 = vld [vmem:[#allocation2 + $0x30] sm:$0xff] }
  0x43   :  { %888 = vmatprep.subr.bf16.mxu0 %v1035_v0  ;;  %v69_v54 = vld [vmem:[#allocation2 + $0x38] sm:$0xff]  ;;  %v70_v55 = vld [vmem:[#allocation2 + $0x40] sm:$0xff]  ;;  %v71_v56 = vld [vmem:[#allocation2 + $0x48] sm:$0xff] }
  0x44   :  { %v72_v57 = vld [vmem:[#allocation2 + $0x50] sm:$0xff]  ;;  %v73_v58 = vld [vmem:[#allocation2 + $0x58] sm:$0xff]  ;;  %v74_v59 = vld [vmem:[#allocation2 + $0x60] sm:$0xff] }
  0x45   :  { %911 = vmatpush3.bf16.msra.mxu1 %v910_v30  ;;  %v75_v60 = vld [vmem:[#allocation2 + $0x68] sm:$0xff]  ;;  %v76_v61 = vld [vmem:[#allocation2 + $0x70] sm:$0xff]  ;;  %v77_v62 = vld [vmem:[#allocation2 + $0x78] sm:$0xff] }
  0x46   :  { %890 = vmatpush3.bf16.msra.mxu0 %v889_v13  ;;  %912 = vmatprep.subr.bf16.mxu1 %v1035_v0  ;;  %v78_v63 = vld [vmem:[#allocation2 + $0x80] sm:$0xff]  ;;  %v80_v2 = vld [vmem:[#allocation2 + $0x90] sm:$0xff]  ;;  %v81_v3 = vld [vmem:[#allocation2 + $0x98] sm:$0xff] }
  0x47   :  { %891 = vmatprep.subr.bf16.mxu0 %v1035_v0  ;;  %v82_v4 = vld [vmem:[#allocation2 + $0xa0] sm:$0xff]  ;;  %v83_v5 = vld [vmem:[#allocation2 + $0xa8] sm:$0xff]  ;;  %v339_v6 = vld [vmem:[#allocation7 + $0x70] sm:$0xff] }
  0x48   :  { %v340_v7 = vld [vmem:[#allocation7 + $0x78] sm:$0xff]  ;;  %v84_v9 = vld [vmem:[#allocation2 + $0xb0] sm:$0xff]  ;;  %v85_v10 = vld [vmem:[#allocation2 + $0xb8] sm:$0xff] }
  0x49   :  { %914 = vmatpush3.bf16.msra.mxu1 %v913_v36  ;;  %v925_v8 = vpack.c.bf16 %v340_v7, %v339_v6  ;;  %v86_v11 = vld [vmem:[#allocation2 + $0xc0] sm:$0xff] }
  0x4a   :  { %893 = vmatpush3.bf16.msra.mxu0 %v892_v20  ;;  %915 = vmatprep.subr.bf16.mxu1 %v1035_v0  ;;  %v1192_v12 = vld [vmem:[%s1314_s2] ss:$0 sm:$0xff] }
  0x4b   :  { %894 = vmatprep.subr.bf16.mxu0 %v1035_v0 }
  0x4d   :  { %917 = vmatpush3.bf16.msra.mxu1 %v916_v40 }
  0x4e   :  { %896 = vmatpush3.bf16.msra.mxu0 %v895_v27  ;;  %918 = vmatprep.subr.bf16.mxu1 %v1035_v0 }
  0x4f   :  { %897 = vmatprep.subr.bf16.mxu0 %v1035_v0 }
  0x51   :  { %920 = vmatpush3.bf16.msra.mxu1 %v919_v44 }
  0x52   :  { %899 = vmatpush3.bf16.msra.mxu0 %v898_v33  ;;  %921 = vmatprep.subr.bf16.mxu1 %v1035_v0 }
  0x53   :  { %900 = vmatprep.subr.bf16.mxu0 %v1035_v0 }
  0x55   :  { %923 = vmatpush3.bf16.msra.mxu1 %v922_v48 }
  0x56   :  { %902 = vmatpush3.bf16.msra.mxu0 %v901_v39  ;;  %924 = vmatprep.subr.bf16.mxu1 %v1035_v0  ;;  %v79_v0 = vld [vmem:[#allocation2 + $0x88] sm:$0xff] }
  0x59   :  { %698 = vmatmul.mubr.f32.vlgmr.msra.gmra.mrb[0].mxu0 %v62_v43  ;;  %926 = vmatpush3.bf16.msra.mxu1 %v925_v8 }
  0x5a   :  { %700 = vmatprep.mubr.msk.f32.mxu0 %vm1036_vm0, %v1037_v1 }
  0x5d   :  { %701 = vmatmul.mubr.f32.gmra.mrb[2].mxu0 %v63_v47 }
  0x5e   :  { %703 = vmatprep.mubr.msk.f32.mxu0 %vm1036_vm0, %v1037_v1 }
  0x61   :  { %704 = vmatmul.mubr.f32.gmra.mrb[4].mxu0 %v64_v49 }
  0x62   :  { %706 = vmatprep.mubr.msk.f32.mxu0 %vm1036_vm0, %v1037_v1 }
  0x65   :  { %707 = vmatmul.mubr.f32.gmra.mrb[6].mxu0 %v65_v50 }
  0x66   :  { %709 = vmatprep.mubr.msk.f32.mxu0 %vm1036_vm0, %v1037_v1 }
  0x69   :  { %710 = vmatmul.mubr.f32.gmra.mrb[8].mxu0 %v66_v51 }
  0x6a   :  { %712 = vmatprep.mubr.msk.f32.mxu0 %vm1036_vm0, %v1037_v1 }
  0x6d   :  { %713 = vmatmul.mubr.f32.gmra.mrb[10].mxu0 %v67_v52 }
  0x6e   :  { %715 = vmatprep.mubr.msk.f32.mxu0 %vm1036_vm0, %v1037_v1 }
  0x71   :  { %716 = vmatmul.mubr.f32.gmra.mrb[12].mxu0 %v68_v53 }
  0x72   :  { %718 = vmatprep.mubr.msk.f32.mxu0 %vm1036_vm0, %v1037_v1 }
  0x75   :  { %719 = vmatmul.mubr.f32.gmra.mrb[14].mxu0 %v69_v54 }
  0x76   :  { %721 = vmatprep.mubr.msk.f32.mxu0 %vm1036_vm0, %v1037_v1 }
  0x79   :  { %722 = vmatmul.mubr.f32.gmra.mrb[16].mxu0 %v70_v55 }
  0x7a   :  { %724 = vmatprep.mubr.msk.f32.mxu0 %vm1036_vm0, %v1037_v1 }
  0x7d   :  { %725 = vmatmul.mubr.f32.gmra.mrb[18].mxu0 %v71_v56 }
  0x7e   :  { %727 = vmatprep.mubr.msk.f32.mxu0 %vm1036_vm0, %v1037_v1 }
  0x81   :  { %728 = vmatmul.mubr.f32.gmra.mrb[20].mxu0 %v72_v57 }
  0x82   :  { %730 = vmatprep.mubr.msk.f32.mxu0 %vm1036_vm0, %v1037_v1 }
  0x85   :  { %731 = vmatmul.mubr.f32.gmra.mrb[22].mxu0 %v73_v58 }
  0x86   :  { %733 = vmatprep.mubr.msk.f32.mxu0 %vm1036_vm0, %v1037_v1 }
  0x89   :  { %734 = vmatmul.mubr.f32.gmra.mrb[24].mxu0 %v74_v59 }
  0x8a   :  { %736 = vmatprep.mubr.msk.f32.mxu0 %vm1036_vm0, %v1037_v1 }
  0x8d   :  { %737 = vmatmul.mubr.f32.gmra.mrb[26].mxu0 %v75_v60 }
  0x8e   :  { %739 = vmatprep.mubr.msk.f32.mxu0 %vm1036_vm0, %v1037_v1 }
  0x91   :  { %740 = vmatmul.mubr.f32.gmra.mrb[28].mxu0 %v76_v61 }
  0x92   :  { %742 = vmatprep.mubr.msk.f32.mxu0 %vm1036_vm0, %v1037_v1 }
  0x95   :  { %743 = vmatmul.mubr.f32.gmra.mrb[30].mxu0 %v77_v62 }
  0x96   :  { %745 = vmatprep.mubr.msk.f32.mxu0 %vm1036_vm0, %v1037_v1 }
  0x99   :  { %746 = vmatmul.mubr.f32.gmra.mrb[32].mxu0 %v78_v63 }
  0x9a   :  { %748 = vmatprep.mubr.msk.f32.mxu0 %vm1036_vm0, %v1037_v1 }
  0x9d   :  { %749 = vmatmul.mubr.f32.gmra.mrb[34].mxu0 %v79_v0 }
  0x9e   :  { %751 = vmatprep.mubr.msk.f32.mxu0 %vm1036_vm0, %v1037_v1 }
  0xa1   :  { %752 = vmatmul.mubr.f32.gmra.mrb[36].mxu0 %v80_v2 }
  0xa2   :  { %754 = vmatprep.mubr.msk.f32.mxu0 %vm1036_vm0, %v1037_v1 }
  0xa5   :  { %755 = vmatmul.mubr.f32.gmra.mrb[38].mxu0 %v81_v3 }
  0xa6   :  { %757 = vmatprep.mubr.msk.f32.mxu0 %vm1036_vm0, %v1037_v1 }
  0xa9   :  { %758 = vmatmul.mubr.f32.gmra.mrb[40].mxu0 %v82_v4 }
  0xaa   :  { %760 = vmatprep.mubr.msk.f32.mxu0 %vm1036_vm0, %v1037_v1 }
  0xad   :  { %761 = vmatmul.mubr.f32.gmra.mrb[42].mxu0 %v83_v5 }
  0xae   :  { %763 = vmatprep.mubr.msk.f32.mxu0 %vm1036_vm0, %v1037_v1 }
  0xb1   :  { %764 = vmatmul.mubr.f32.gmra.mrb[44].mxu0 %v84_v9 }
  0xb2   :  { %766 = vmatprep.mubr.msk.f32.mxu0 %vm1036_vm0, %v1037_v1 }
  0xb5   :  { %767 = vmatmul.mubr.f32.gmra.mrb[46].mxu0 %v85_v10 }
  0xb6   :  { %769 = vmatprep.mubr.msk.f32.mxu0 %vm1036_vm0, %v1037_v1 }
  0xb9   :  { %770 = vmatmul.mubr.f32.gmra.mrb[48].mxu0 %v86_v11 }
 0x12c   :  { %v176_v13 = vpop.f32.mrb[0].mxu0 }
 0x12d   :  { %v177_v14 = vadd.f32 %v1192_v12, %v176_v13  ;;  %v699_v15 = vpop.f32.mrb[1].mxu0 }
 0x12f   :  { %v300_v16 = vmax.f32 %v177_v14, 0.0 }
 0x130   :  { %v181_v17 = vpop.f32.mrb[2].mxu0 }
 0x131   :  { %v182_v18 = vadd.f32 %v1192_v12, %v181_v17  ;;  %v702_v19 = vpop.f32.mrb[3].mxu0  ;;  %805 = vmatmul.mubr.f32.vlgmr.msra.gmra.mrb[0].mxu1 %v300_v16 }
 0x132   :  { %807 = vmatprep.mubr.msk.f32.mxu1 %vm1036_vm0, %v1037_v1 }
 0x133   :  { %v301_v20 = vmax.f32 %v182_v18, 0.0 }
 0x134   :  { %v186_v21 = vpop.f32.mrb[4].mxu0 }
 0x135   :  { %v187_v22 = vadd.f32 %v1192_v12, %v186_v21  ;;  %v705_v23 = vpop.f32.mrb[5].mxu0  ;;  %808 = vmatmul.mubr.f32.gmra.mrb[2].mxu1 %v301_v20 }
 0x136   :  { %810 = vmatprep.mubr.msk.f32.mxu1 %vm1036_vm0, %v1037_v1 }
 0x137   :  { %v302_v24 = vmax.f32 %v187_v22, 0.0 }
 0x138   :  { %v191_v25 = vpop.f32.mrb[6].mxu0 }
 0x139   :  { %v192_v26 = vadd.f32 %v1192_v12, %v191_v25  ;;  %v708_v27 = vpop.f32.mrb[7].mxu0  ;;  %811 = vmatmul.mubr.f32.gmra.mrb[4].mxu1 %v302_v24 }
 0x13a   :  { %813 = vmatprep.mubr.msk.f32.mxu1 %vm1036_vm0, %v1037_v1 }
 0x13b   :  { %v303_v28 = vmax.f32 %v192_v26, 0.0 }
 0x13c   :  { %v196_v29 = vpop.f32.mrb[8].mxu0 }
 0x13d   :  { %v197_v30 = vadd.f32 %v1192_v12, %v196_v29  ;;  %v711_v31 = vpop.f32.mrb[9].mxu0  ;;  %814 = vmatmul.mubr.f32.gmra.mrb[6].mxu1 %v303_v28 }
 0x13e   :  { %816 = vmatprep.mubr.msk.f32.mxu1 %vm1036_vm0, %v1037_v1 }
 0x13f   :  { %v304_v32 = vmax.f32 %v197_v30, 0.0 }
 0x140   :  { %v201_v33 = vpop.f32.mrb[10].mxu0 }
 0x141   :  { %v202_v34 = vadd.f32 %v1192_v12, %v201_v33  ;;  %v714_v35 = vpop.f32.mrb[11].mxu0  ;;  %817 = vmatmul.mubr.f32.gmra.mrb[8].mxu1 %v304_v32 }
 0x142   :  { %819 = vmatprep.mubr.msk.f32.mxu1 %vm1036_vm0, %v1037_v1 }
 0x143   :  { %v305_v36 = vmax.f32 %v202_v34, 0.0 }
 0x144   :  { %v206_v37 = vpop.f32.mrb[12].mxu0 }
 0x145   :  { %v207_v38 = vadd.f32 %v1192_v12, %v206_v37  ;;  %v717_v39 = vpop.f32.mrb[13].mxu0  ;;  %820 = vmatmul.mubr.f32.gmra.mrb[10].mxu1 %v305_v36 }
 0x146   :  { %822 = vmatprep.mubr.msk.f32.mxu1 %vm1036_vm0, %v1037_v1 }
 0x147   :  { %v306_v40 = vmax.f32 %v207_v38, 0.0 }
 0x148   :  { %v211_v41 = vpop.f32.mrb[14].mxu0 }
 0x149   :  { %v212_v42 = vadd.f32 %v1192_v12, %v211_v41  ;;  %v720_v43 = vpop.f32.mrb[15].mxu0  ;;  %823 = vmatmul.mubr.f32.gmra.mrb[12].mxu1 %v306_v40 }
 0x14a   :  { %825 = vmatprep.mubr.msk.f32.mxu1 %vm1036_vm0, %v1037_v1 }
 0x14b   :  { %v307_v44 = vmax.f32 %v212_v42, 0.0 }
 0x14c   :  { %v216_v45 = vpop.f32.mrb[16].mxu0 }
 0x14d   :  { %v217_v46 = vadd.f32 %v1192_v12, %v216_v45  ;;  %v723_v47 = vpop.f32.mrb[17].mxu0  ;;  %826 = vmatmul.mubr.f32.gmra.mrb[14].mxu1 %v307_v44 }
 0x14e   :  { %828 = vmatprep.mubr.msk.f32.mxu1 %vm1036_vm0, %v1037_v1 }
 0x14f   :  { %v308_v48 = vmax.f32 %v217_v46, 0.0 }
 0x150   :  { %v221_v49 = vpop.f32.mrb[18].mxu0 }
 0x151   :  { %v222_v50 = vadd.f32 %v1192_v12, %v221_v49  ;;  %v726_v51 = vpop.f32.mrb[19].mxu0  ;;  %829 = vmatmul.mubr.f32.gmra.mrb[16].mxu1 %v308_v48 }
 0x152   :  { %831 = vmatprep.mubr.msk.f32.mxu1 %vm1036_vm0, %v1037_v1  ;;  %v1270_v51 = vld [vmem:[%s1316_s4] ss:$0 sm:$0xff]  ;;  %s1038_s4 = smov [#allocation8]  }
 0x153   :  { %v309_v52 = vmax.f32 %v222_v50, 0.0  ;;  %s568_s8 = sshll.u32 %s1038_s4, 4  ;;  %s569_s8 = int_to_ptr.vmem [resolvable:$true] %s568_s8 }
 0x154   :  { %v226_v53 = vpop.f32.mrb[20].mxu0  ;;  %s1002_s9 = scalar_lea.vmem %s569_s8, 3200  ;;  %p1007_p11 = scmp.lt.s32.totalorder %s569_s8, %s569_s8 }
 0x155   :  { %v227_v54 = vadd.f32 %v1192_v12, %v226_v53  ;;  %v729_v55 = vpop.f32.mrb[21].mxu0  ;;  %832 = vmatmul.mubr.f32.gmra.mrb[18].mxu1 %v309_v52  ;;  %p1003_p10 = scmp.ne.s32.totalorder %s569_s8, %s1002_s9  ;;  %p1008_p12 = scmp.lt.s32.totalorder %s1002_s9, %s1002_s9 }
 0x156   :  { %834 = vmatprep.mubr.msk.f32.mxu1 %vm1036_vm0, %v1037_v1 }
 0x157   :  { %v310_v56 = vmax.f32 %v227_v54, 0.0  ;;  %p1009_p13 = por %p1008_p12, %p1007_p11 }
 0x158   :  { %v231_v57 = vpop.f32.mrb[22].mxu0 }
 0x159   :  { %v232_v58 = vadd.f32 %v1192_v12, %v231_v57  ;;  %v732_v59 = vpop.f32.mrb[23].mxu0  ;;  %835 = vmatmul.mubr.f32.gmra.mrb[20].mxu1 %v310_v56  ;;  %p1010_p0 = pnand %p1009_p13, %p1003_p10 }
 0x15a   :  { %837 = vmatprep.mubr.msk.f32.mxu1 %vm1036_vm0, %v1037_v1 }
 0x15b   :  { %v311_v60 = vmax.f32 %v232_v58, 0.0 }
 0x15c   :  { %v236_v61 = vpop.f32.mrb[24].mxu0 }
 0x15d   :  { %v237_v62 = vadd.f32 %v1192_v12, %v236_v61  ;;  %v735_v63 = vpop.f32.mrb[25].mxu0  ;;  %838 = vmatmul.mubr.f32.gmra.mrb[22].mxu1 %v311_v60 }
 0x15e   :  { %840 = vmatprep.mubr.msk.f32.mxu1 %vm1036_vm0, %v1037_v1 }
 0x15f   :  { %v312_v0 = vmax.f32 %v237_v62, 0.0 }
 0x160   :  { %v241_v2 = vpop.f32.mrb[26].mxu0 }
 0x161   :  { %v242_v3 = vadd.f32 %v1192_v12, %v241_v2  ;;  %v738_v4 = vpop.f32.mrb[27].mxu0  ;;  %841 = vmatmul.mubr.f32.gmra.mrb[24].mxu1 %v312_v0 }
 0x162   :  { %843 = vmatprep.mubr.msk.f32.mxu1 %vm1036_vm0, %v1037_v1 }
 0x163   :  { %v313_v5 = vmax.f32 %v242_v3, 0.0 }
 0x164   :  { %v246_v6 = vpop.f32.mrb[28].mxu0 }
 0x165   :  { %v247_v7 = vadd.f32 %v1192_v12, %v246_v6  ;;  %v741_v8 = vpop.f32.mrb[29].mxu0  ;;  %844 = vmatmul.mubr.f32.gmra.mrb[26].mxu1 %v313_v5 }
 0x166   :  { %846 = vmatprep.mubr.msk.f32.mxu1 %vm1036_vm0, %v1037_v1 }
 0x167   :  { %v314_v9 = vmax.f32 %v247_v7, 0.0 }
 0x168   :  { %v251_v10 = vpop.f32.mrb[30].mxu0 }
 0x169   :  { %v252_v11 = vadd.f32 %v1192_v12, %v251_v10  ;;  %v744_v13 = vpop.f32.mrb[31].mxu0  ;;  %847 = vmatmul.mubr.f32.gmra.mrb[28].mxu1 %v314_v9 }
 0x16a   :  { %849 = vmatprep.mubr.msk.f32.mxu1 %vm1036_vm0, %v1037_v1 }
 0x16b   :  { %v315_v14 = vmax.f32 %v252_v11, 0.0 }
 0x16c   :  { %v256_v15 = vpop.f32.mrb[32].mxu0 }
 0x16d   :  { %v257_v16 = vadd.f32 %v1192_v12, %v256_v15  ;;  %v747_v17 = vpop.f32.mrb[33].mxu0  ;;  %850 = vmatmul.mubr.f32.gmra.mrb[30].mxu1 %v315_v14 }
 0x16e   :  { %852 = vmatprep.mubr.msk.f32.mxu1 %vm1036_vm0, %v1037_v1 }
 0x16f   :  { %v316_v18 = vmax.f32 %v257_v16, 0.0 }
 0x170   :  { %v261_v19 = vpop.f32.mrb[34].mxu0 }
 0x171   :  { %v262_v20 = vadd.f32 %v1192_v12, %v261_v19  ;;  %v750_v21 = vpop.f32.mrb[35].mxu0  ;;  %853 = vmatmul.mubr.f32.gmra.mrb[32].mxu1 %v316_v18 }
 0x172   :  { %855 = vmatprep.mubr.msk.f32.mxu1 %vm1036_vm0, %v1037_v1 }
 0x173   :  { %v317_v22 = vmax.f32 %v262_v20, 0.0 }
 0x174   :  { %v266_v23 = vpop.f32.mrb[36].mxu0 }
 0x175   :  { %v267_v24 = vadd.f32 %v1192_v12, %v266_v23  ;;  %v753_v25 = vpop.f32.mrb[37].mxu0  ;;  %856 = vmatmul.mubr.f32.gmra.mrb[34].mxu1 %v317_v22 }
 0x176   :  { %858 = vmatprep.mubr.msk.f32.mxu1 %vm1036_vm0, %v1037_v1 }
 0x177   :  { %v318_v26 = vmax.f32 %v267_v24, 0.0 }
 0x178   :  { %v271_v27 = vpop.f32.mrb[38].mxu0 }
 0x179   :  { %v272_v28 = vadd.f32 %v1192_v12, %v271_v27  ;;  %v756_v29 = vpop.f32.mrb[39].mxu0  ;;  %859 = vmatmul.mubr.f32.gmra.mrb[36].mxu1 %v318_v26 }
 0x17a   :  { %861 = vmatprep.mubr.msk.f32.mxu1 %vm1036_vm0, %v1037_v1 }
 0x17b   :  { %v319_v30 = vmax.f32 %v272_v28, 0.0 }
 0x17c   :  { %v276_v31 = vpop.f32.mrb[40].mxu0 }
 0x17d   :  { %v277_v32 = vadd.f32 %v1192_v12, %v276_v31  ;;  %v759_v33 = vpop.f32.mrb[41].mxu0  ;;  %862 = vmatmul.mubr.f32.gmra.mrb[38].mxu1 %v319_v30 }
 0x17e   :  { %864 = vmatprep.mubr.msk.f32.mxu1 %vm1036_vm0, %v1037_v1 }
 0x17f   :  { %v320_v34 = vmax.f32 %v277_v32, 0.0 }
 0x180   :  { %v281_v35 = vpop.f32.mrb[42].mxu0 }
 0x181   :  { %v282_v36 = vadd.f32 %v1192_v12, %v281_v35  ;;  %v762_v37 = vpop.f32.mrb[43].mxu0  ;;  %865 = vmatmul.mubr.f32.gmra.mrb[40].mxu1 %v320_v34 }
 0x182   :  { %867 = vmatprep.mubr.msk.f32.mxu1 %vm1036_vm0, %v1037_v1 }
 0x183   :  { %v321_v38 = vmax.f32 %v282_v36, 0.0 }
 0x184   :  { %v286_v39 = vpop.f32.mrb[44].mxu0 }
 0x185   :  { %v287_v40 = vadd.f32 %v1192_v12, %v286_v39  ;;  %v765_v41 = vpop.f32.mrb[45].mxu0  ;;  %868 = vmatmul.mubr.f32.gmra.mrb[42].mxu1 %v321_v38 }
 0x186   :  { %870 = vmatprep.mubr.msk.f32.mxu1 %vm1036_vm0, %v1037_v1 }
 0x187   :  { %v322_v42 = vmax.f32 %v287_v40, 0.0 }
 0x188   :  { %v291_v43 = vpop.f32.mrb[46].mxu0 }
 0x189   :  { %v292_v44 = vadd.f32 %v1192_v12, %v291_v43  ;;  %v768_v45 = vpop.f32.mrb[47].mxu0  ;;  %871 = vmatmul.mubr.f32.gmra.mrb[44].mxu1 %v322_v42 }
 0x18a   :  { %873 = vmatprep.mubr.msk.f32.mxu1 %vm1036_vm0, %v1037_v1 }
 0x18b   :  { %v323_v46 = vmax.f32 %v292_v44, 0.0 }
 0x18c   :  { %v296_v47 = vpop.f32.mrb[48].mxu0 }
 0x18d   :  { %v297_v48 = vadd.f32 %v1192_v12, %v296_v47  ;;  %v771_v49 = vpop.f32.mrb[49].mxu0  ;;  %874 = vmatmul.mubr.f32.gmra.mrb[46].mxu1 %v323_v46 }
 0x18e   :  { %876 = vmatprep.mubr.msk.f32.mxu1 %vm1036_vm0, %v1037_v1 }
 0x18f   :  { %v324_v50 = vmax.f32 %v297_v48, 0.0 }
 0x191   :  { %877 = vmatmul.mubr.f32.gmra.mrb[48].mxu1 %v324_v50 }
 0x204   :  { %v414_v52 = vpop.f32.mrb[0].mxu1 }
 0x205   :  { %v415_v53 = vadd.f32 %v1270_v51, %v414_v52  ;;  %v806_v54 = vpop.f32.mrb[1].mxu1 }
 0x207   :  { %538 = vst [vmem:[#allocation8] sm:$0xff] %v415_v53 }
 0x208   :  { %v419_v55 = vpop.f32.mrb[2].mxu1 }
 0x209   :  { %v420_v12 = vadd.f32 %v1270_v51, %v419_v55  ;;  %v809_v56 = vpop.f32.mrb[3].mxu1 }
 0x20b   :  { %539 = vst [vmem:[#allocation8 + $0x8] sm:$0xff] %v420_v12 }
 0x20c   :  { %v424_v57 = vpop.f32.mrb[4].mxu1 }
 0x20d   :  { %v425_v1 = vadd.f32 %v1270_v51, %v424_v57  ;;  %v812_v58 = vpop.f32.mrb[5].mxu1 }
 0x20f   :  { %540 = vst [vmem:[#allocation8 + $0x10] sm:$0xff] %v425_v1 }
 0x210   :  { %v429_v59 = vpop.f32.mrb[6].mxu1 }
 0x211   :  { %v430_v60 = vadd.f32 %v1270_v51, %v429_v59  ;;  %v815_v61 = vpop.f32.mrb[7].mxu1 }
 0x213   :  { %541 = vst [vmem:[#allocation8 + $0x18] sm:$0xff] %v430_v60 }
 0x214   :  { %v434_v62 = vpop.f32.mrb[8].mxu1 }
 0x215   :  { %v435_v63 = vadd.f32 %v1270_v51, %v434_v62  ;;  %v818_v0 = vpop.f32.mrb[9].mxu1 }
 0x217   :  { %542 = vst [vmem:[#allocation8 + $0x20] sm:$0xff] %v435_v63 }
 0x218   :  { %v439_v2 = vpop.f32.mrb[10].mxu1 }
 0x219   :  { %v440_v3 = vadd.f32 %v1270_v51, %v439_v2  ;;  %v821_v4 = vpop.f32.mrb[11].mxu1 }
 0x21b   :  { %543 = vst [vmem:[#allocation8 + $0x28] sm:$0xff] %v440_v3 }
 0x21c   :  { %v444_v5 = vpop.f32.mrb[12].mxu1 }
 0x21d   :  { %v445_v6 = vadd.f32 %v1270_v51, %v444_v5  ;;  %v824_v7 = vpop.f32.mrb[13].mxu1 }
 0x21f   :  { %544 = vst [vmem:[#allocation8 + $0x30] sm:$0xff] %v445_v6 }
 0x220   :  { %v449_v8 = vpop.f32.mrb[14].mxu1 }
 0x221   :  { %v450_v9 = vadd.f32 %v1270_v51, %v449_v8  ;;  %v827_v10 = vpop.f32.mrb[15].mxu1 }
 0x223   :  { %545 = vst [vmem:[#allocation8 + $0x38] sm:$0xff] %v450_v9 }
 0x224   :  { %v454_v11 = vpop.f32.mrb[16].mxu1 }
 0x225   :  { %v455_v13 = vadd.f32 %v1270_v51, %v454_v11  ;;  %v830_v14 = vpop.f32.mrb[17].mxu1 }
 0x227   :  { %546 = vst [vmem:[#allocation8 + $0x40] sm:$0xff] %v455_v13 }
 0x228   :  { %v459_v15 = vpop.f32.mrb[18].mxu1 }
 0x229   :  { %v460_v16 = vadd.f32 %v1270_v51, %v459_v15  ;;  %v833_v17 = vpop.f32.mrb[19].mxu1 }
 0x22b   :  { %547 = vst [vmem:[#allocation8 + $0x48] sm:$0xff] %v460_v16 }
 0x22c   :  { %v464_v18 = vpop.f32.mrb[20].mxu1 }
 0x22d   :  { %v465_v19 = vadd.f32 %v1270_v51, %v464_v18  ;;  %v836_v20 = vpop.f32.mrb[21].mxu1 }
 0x22f   :  { %548 = vst [vmem:[#allocation8 + $0x50] sm:$0xff] %v465_v19 }
 0x230   :  { %v469_v21 = vpop.f32.mrb[22].mxu1 }
 0x231   :  { %v470_v22 = vadd.f32 %v1270_v51, %v469_v21  ;;  %v839_v23 = vpop.f32.mrb[23].mxu1 }
 0x233   :  { %549 = vst [vmem:[#allocation8 + $0x58] sm:$0xff] %v470_v22 }
 0x234   :  { %v474_v24 = vpop.f32.mrb[24].mxu1 }
 0x235   :  { %v475_v25 = vadd.f32 %v1270_v51, %v474_v24  ;;  %v842_v26 = vpop.f32.mrb[25].mxu1 }
 0x237   :  { %550 = vst [vmem:[#allocation8 + $0x60] sm:$0xff] %v475_v25 }
 0x238   :  { %v479_v27 = vpop.f32.mrb[26].mxu1 }
 0x239   :  { %v480_v28 = vadd.f32 %v1270_v51, %v479_v27  ;;  %v845_v29 = vpop.f32.mrb[27].mxu1 }
 0x23b   :  { %551 = vst [vmem:[#allocation8 + $0x68] sm:$0xff] %v480_v28 }
 0x23c   :  { %v484_v30 = vpop.f32.mrb[28].mxu1 }
 0x23d   :  { %v485_v31 = vadd.f32 %v1270_v51, %v484_v30  ;;  %v848_v32 = vpop.f32.mrb[29].mxu1 }
 0x23f   :  { %552 = vst [vmem:[#allocation8 + $0x70] sm:$0xff] %v485_v31 }
 0x240   :  { %v489_v33 = vpop.f32.mrb[30].mxu1 }
 0x241   :  { %v490_v34 = vadd.f32 %v1270_v51, %v489_v33  ;;  %v851_v35 = vpop.f32.mrb[31].mxu1 }
 0x243   :  { %553 = vst [vmem:[#allocation8 + $0x78] sm:$0xff] %v490_v34 }
 0x244   :  { %v494_v36 = vpop.f32.mrb[32].mxu1 }
 0x245   :  { %v495_v37 = vadd.f32 %v1270_v51, %v494_v36  ;;  %v854_v38 = vpop.f32.mrb[33].mxu1 }
 0x247   :  { %554 = vst [vmem:[#allocation8 + $0x80] sm:$0xff] %v495_v37 }
 0x248   :  { %v499_v39 = vpop.f32.mrb[34].mxu1 }
 0x249   :  { %v500_v40 = vadd.f32 %v1270_v51, %v499_v39  ;;  %v857_v41 = vpop.f32.mrb[35].mxu1 }
 0x24b   :  { %555 = vst [vmem:[#allocation8 + $0x88] sm:$0xff] %v500_v40 }
 0x24c   :  { %v504_v42 = vpop.f32.mrb[36].mxu1 }
 0x24d   :  { %v505_v43 = vadd.f32 %v1270_v51, %v504_v42  ;;  %v860_v44 = vpop.f32.mrb[37].mxu1 }
 0x24f   :  { %556 = vst [vmem:[#allocation8 + $0x90] sm:$0xff] %v505_v43 }
 0x250   :  { %v509_v45 = vpop.f32.mrb[38].mxu1 }
 0x251   :  { %v510_v46 = vadd.f32 %v1270_v51, %v509_v45  ;;  %v863_v47 = vpop.f32.mrb[39].mxu1 }
 0x253   :  { %557 = vst [vmem:[#allocation8 + $0x98] sm:$0xff] %v510_v46 }
 0x254   :  { %v514_v48 = vpop.f32.mrb[40].mxu1 }
 0x255   :  { %v515_v49 = vadd.f32 %v1270_v51, %v514_v48  ;;  %v866_v50 = vpop.f32.mrb[41].mxu1 }
 0x257   :  { %558 = vst [vmem:[#allocation8 + $0xa0] sm:$0xff] %v515_v49 }
 0x258   :  { %v519_v52 = vpop.f32.mrb[42].mxu1 }
 0x259   :  { %v520_v53 = vadd.f32 %v1270_v51, %v519_v52  ;;  %v869_v54 = vpop.f32.mrb[43].mxu1 }
 0x25b   :  { %559 = vst [vmem:[#allocation8 + $0xa8] sm:$0xff] %v520_v53 }
 0x25c   :  { %v524_v55 = vpop.f32.mrb[44].mxu1 }
 0x25d   :  { %v525_v12 = vadd.f32 %v1270_v51, %v524_v55  ;;  %v872_v56 = vpop.f32.mrb[45].mxu1 }
 0x25f   :  { %560 = vst [vmem:[#allocation8 + $0xb0] sm:$0xff] %v525_v12 }
 0x260   :  { %v529_v57 = vpop.f32.mrb[46].mxu1 }
 0x261   :  { %v530_v1 = vadd.f32 %v1270_v51, %v529_v57  ;;  %v875_v58 = vpop.f32.mrb[47].mxu1 }
 0x263   :  { %561 = vst [vmem:[#allocation8 + $0xb8] sm:$0xff] %v530_v1 }
 0x264   :  { %v534_v59 = vpop.f32.mrb[48].mxu1 }
 0x265   :  { %v535_v60 = vadd.f32 %v1270_v51, %v534_v59  ;;  %v878_v61 = vpop.f32.mrb[49].mxu1 }
 0x267   :  { %562 = vst [vmem:[#allocation8 + $0xc0] sm:$0xff] %v535_v60 }
 0x268   :  { %1013 = shalt.err (!%p1010_p0)
}
 0x269   :  { %s1014_s12 = scalar_lea.hbm %s1317_s5, 3200 }
 0x26a   :  { %p1015_p1 = scmp.ne.s32.totalorder %s1317_s5, %s1014_s12  ;;  %p1018_p2 = scmp.lt.u32.totalorder %s1014_s12, %s1317_s5 }
 0x26c   :  { %p1020_p3 = pnand %p1018_p2, %p1015_p1 }
 0x26e   :  { %1023 = shalt.err (!%p1020_p3)
}
 0x26f   :  { %574 = dma.vmem_to_hbm [thread:$0]  %s569_s8, 3200, %s1317_s5, [#allocation4], %s1032_s30, %s1032_s30, %s1033_s6  }
 0x270   :  { %1028 = dma.done.wait [#allocation4], 3200  }
 0x271   :  { %1029 = vsyncadd [#allocation4], 4294964096 }
 0x272   :  { %578 = vsyncpa [#allocation3], 1 }
 0x273   :  { %579 = vsyncpa [#allocation6], 1 }
 0x274   :  { %580 = vsyncpa [#allocation4], 1 }

</bundles_post_ra>
